<compile_context>
chip_gen: v7x
topology: tpu7x:2x2x1
jax: 0.10.0
libtpu: 0.0.40
codegen_flags: <defaults>
</compile_context>

<pallas_src>
import math
from functools import partial

import jax
import jax.numpy as jnp
from jax import lax
from jax.experimental import pallas as pl
from jax.experimental.pallas import tpu as pltpu
from jax.scipy import linalg as jsl


_MAX_TILE = 512                  # fits VMEM comfortably on v5e/v6e/v7x
_VMEM_LIMIT = 48 * 1024 * 1024   # above defaults, headroom under v7x's 64 MiB


def _round_up(x, m):
    return ((x + m - 1) // m) * m


def _pad2d(a, rows, cols):
    r, c = a.shape
    if r == rows and c == cols:
        return a
    return jnp.pad(a, ((0, rows - r), (0, cols - c)))


# ----------------------------------------------------------------------------
# Pallas kernel 1: tiled RBF kernel matrix (optionally with fused lam*I)
# ----------------------------------------------------------------------------
def _rbf_kernel_body(params_ref, xa_ref, xb_ref, out_ref, *, add_diag):
    # params (SMEM): [sqrt(0.5)*exp(-log_lengthscale), 2*log_sigma, exp(log_lam)]
    inv_l = params_ref[0]
    two_log_sigma = params_ref[1]

    # Pre-scale the skinny (tile, D) operands so `sq` already carries the
    # lengthscale; sigma^2 folds into the exponent -> one exp, no extra
    # full-tile multiplies.
    xa = xa_ref[...].astype(jnp.float32) * inv_l          # (tn, D)
    xb = xb_ref[...].astype(jnp.float32) * inv_l          # (tm, D)
    a2 = jnp.sum(xa * xa, axis=-1, keepdims=True)         # (tn, 1)
    b2 = jnp.sum(xb * xb, axis=-1, keepdims=True)         # (tm, 1)
    cross = lax.dot_general(                               # MXU, (tn, tm)
        xa, xb, (((1,), (1,)), ((), ())),
        preferred_element_type=jnp.float32)
    sq = jnp.maximum(a2 - 2.0 * cross + b2.T, 0.0)
    out_ref[...] = jnp.exp(two_log_sigma - sq)             # EUP

    if add_diag:
        # K = k(x_fit, x_fit) + lam*I: ridge fused on diagonal tiles only
        # (requires square tiles, enforced by the wrapper).
        @pl.when(pl.program_id(0) == pl.program_id(1))
        def _():
            lam = params_ref[2]
            tn, tm = out_ref.shape
            rows = lax.broadcasted_iota(jnp.int32, (tn, tm), 0)
            cols = lax.broadcasted_iota(jnp.int32, (tn, tm), 1)
            out_ref[...] = out_ref[...] + jnp.where(rows == cols, lam, 0.0)


def rbf_kernel_matrix(xa, xb, params, *, add_diag=False, max_tile=_MAX_TILE):
    """k(xa, xb) -> (N, M); if add_diag, also adds exp(log_lam)*I (N==M)."""
    n, d = xa.shape
    m, _ = xb.shape
    if add_diag:
        # square tiles so the diagonal lives exactly on tiles with i == j
        tn = tm = min(max_tile, _round_up(max(n, m), 128))
    else:
        tn = min(max_tile, _round_up(n, 8))
        tm = min(max_tile, _round_up(m, 128))
    n_pad = _round_up(n, tn)
    m_pad = _round_up(m, tm)
    xa_p = _pad2d(xa.astype(jnp.float32), n_pad, d)
    xb_p = _pad2d(xb.astype(jnp.float32), m_pad, d)

    cost = pl.CostEstimate(
        flops=2 * n_pad * m_pad * d + 6 * n_pad * m_pad,
        transcendentals=n_pad * m_pad,
        bytes_accessed=4 * (n_pad * d + m_pad * d + n_pad * m_pad))

    out = pl.pallas_call(
        partial(_rbf_kernel_body, add_diag=add_diag),
        out_shape=jax.ShapeDtypeStruct((n_pad, m_pad), jnp.float32),
        grid=(n_pad // tn, m_pad // tm),
        in_specs=[
            pl.BlockSpec(memory_space=pltpu.MemorySpace.SMEM),   # params
            pl.BlockSpec((tn, d), lambda i, j: (i, 0)),
            pl.BlockSpec((tm, d), lambda i, j: (j, 0)),
        ],
        out_specs=pl.BlockSpec((tn, tm), lambda i, j: (i, j)),
        compiler_params=pltpu.CompilerParams(
            dimension_semantics=("parallel", "parallel"),
            vmem_limit_bytes=_VMEM_LIMIT),
        cost_estimate=cost,
    )(params, xa_p, xb_p)
    return out[:n, :m]


# ----------------------------------------------------------------------------
# Pallas kernel 2: projection  solved.T @ F  (transpose absorbed into the MXU)
# ----------------------------------------------------------------------------
def _proj_matmul_body(a_ref, b_ref, out_ref, acc_ref):
    @pl.when(pl.program_id(2) == 0)
    def _():
        acc_ref[...] = jnp.zeros_like(acc_ref)

    # a: (tk, tm) slice of solved, b: (tk, tp) slice of F; contract axis 0.
    acc_ref[...] += lax.dot_general(
        a_ref[...], b_ref[...], (((0,), (0,)), ((), ())),
        preferred_element_type=jnp.float32)

    @pl.when(pl.program_id(2) == pl.num_programs(2) - 1)
    def _():
        out_ref[...] = acc_ref[...].astype(out_ref.dtype)


def project(solved, f, *, max_tile=_MAX_TILE):
    """(N, M), (N, P) -> (M, P) == solved.T @ f, without materializing .T"""
    n, m = solved.shape
    n2, p = f.shape
    assert n == n2
    tk = min(max_tile, _round_up(n, 8))
    tm = min(max_tile, _round_up(m, 128))
    tp = min(max_tile, _round_up(p, 128))
    n_pad = _round_up(n, tk)
    m_pad = _round_up(m, tm)
    p_pad = _round_up(p, tp)
    a = _pad2d(solved.astype(jnp.float32), n_pad, m_pad)
    b = _pad2d(f.astype(jnp.float32), n_pad, p_pad)

    cost = pl.CostEstimate(
        flops=2 * m_pad * p_pad * n_pad,
        transcendentals=0,
        bytes_accessed=4 * (n_pad * m_pad + n_pad * p_pad + m_pad * p_pad))

    out = pl.pallas_call(
        _proj_matmul_body,
        out_shape=jax.ShapeDtypeStruct((m_pad, p_pad), jnp.float32),
        grid=(m_pad // tm, p_pad // tp, n_pad // tk),
        in_specs=[
            pl.BlockSpec((tk, tm), lambda i, j, k: (k, i)),
            pl.BlockSpec((tk, tp), lambda i, j, k: (k, j)),
        ],
        out_specs=pl.BlockSpec((tm, tp), lambda i, j, k: (i, j)),
        scratch_shapes=[pltpu.VMEM((tm, tp), jnp.float32)],
        compiler_params=pltpu.CompilerParams(
            dimension_semantics=("parallel", "parallel", "arbitrary"),
            vmem_limit_bytes=_VMEM_LIMIT),
        cost_estimate=cost,
    )(a, b)
    return out[:m, :p]


# ----------------------------------------------------------------------------
# KernelRidgeRegressor (JAX / Pallas version)
# ----------------------------------------------------------------------------
class KernelRidgeRegressor:
    def __init__(self, log_sigma=0.0, log_lengthscale=0.0,
                 log_lam=math.log(1e-2), centre_elbo=False):
        self.log_sigma = log_sigma
        self.log_lengthscale = log_lengthscale
        self.log_lam = log_lam
        self.centre_elbo = centre_elbo
        self.x_fit = None
        self.training = True  # matches nn.Module default
        self._k_key = None

    # --- hyperparameters packed for the SMEM scalar input --------------------
    def _params_array(self):
        return jnp.array(
            [math.sqrt(0.5) * math.exp(-self.log_lengthscale),
             2.0 * self.log_sigma,
             math.exp(self.log_lam)],
            dtype=jnp.float32)

    def _hyper_key(self):
        return (float(self.log_sigma), float(self.log_lengthscale),
                float(self.log_lam))

    # --- fit / K maintenance --------------------------------------------------
    def fit(self, x_fit, *fs):
        self.nsleep = x_fit.shape[0]
        for f in fs:
            assert f.shape[0] == self.nsleep
        self.x_fit = x_fit
        self.fs = list(fs)
        self.update_K()

    def update_K(self):
        params = self._params_array()
        # Ridge term exp(log_lam)*I is fused into the Pallas RBF kernel.
        self.K = rbf_kernel_matrix(self.x_fit, self.x_fit, params,
                                   add_diag=True)
        # TODO(synk): dense SPD factorization / triangular solve has no clean
        # Pallas equivalent; cached Cholesky handled by XLA.
        self._chol = jsl.cho_factor(self.K, lower=True)
        self._k_key = self._hyper_key()

    def _maybe_update_K(self):
        # Original module recomputes K on every training forward; since the
        # hyperparameters and x_fit are unchanged the result is identical, so
        # only refactorize when they actually change.
        if self._k_key != self._hyper_key():
            self.update_K()

    def train(self, mode=True):
        self.training = mode
        if not mode and self.x_fit is not None:
            self.update_K()
        return self

    # --- forward ---------------------------------------------------------------
    def _project_all(self, solved, f_list):
        # Concatenate along P for a lane-dense single matmul, slice afterwards.
        widths = [f.shape[1] for f in f_list]
        F = jnp.concatenate([f.astype(jnp.float32) for f in f_list], axis=1)
        out = project(solved, F)
        outs, off = [], 0
        for w in widths:
            outs.append(out[:, off:off + w])
            off += w
        return outs

    def forward(self, x, index=None):
        params = self._params_array()
        G = rbf_kernel_matrix(self.x_fit, x, params)          # (N, M), Pallas
        if self.training:
            self._maybe_update_K()
        # solved = K^{-1} G, (N, M); GKinv = solved.T is never materialized —
        # the projection kernel contracts the leading axis directly.
        solved = jsl.cho_solve(self._chol, G)

        if not self.centre_elbo:
            if index is None:
                return self._project_all(solved, list(self.fs))
            return project(solved, self.fs[index])
        elif index is None:
            elbo_mean = jnp.mean(self.fs[-1], axis=0)
            outs = self._project_all(
                solved, list(self.fs[:-1]) + [self.fs[-1] - elbo_mean])
            outs[-1] = outs[-1] + elbo_mean
            return outs
        elif index == -1 or index == len(self.fs) - 1:
            elbo_mean = jnp.mean(self.fs[-1], axis=0)
            return project(solved, self.fs[index] - elbo_mean) + elbo_mean
        else:
            return project(solved, self.fs[index])

    __call__ = forward


# ----------------------------------------------------------------------------
# Reference (pure JAX) for correctness checking
# ----------------------------------------------------------------------------
def _rbf_ref(xa, xb, log_sigma, log_lengthscale):
    sq = jnp.sum((xa[:, None, :] - xb[None, :, :]) ** 2, axis=-1)
    return math.exp(2.0 * log_sigma) * jnp.exp(
        -0.5 * sq * math.exp(-2.0 * log_lengthscale))


def _forward_ref(model, x):
    K = _rbf_ref(model.x_fit, model.x_fit, model.log_sigma, model.log_lengthscale)
    K = K + math.exp(model.log_lam) * jnp.eye(model.nsleep, dtype=jnp.float32)
    G = _rbf_ref(model.x_fit, x, model.log_sigma, model.log_lengthscale)
    GKinv = jnp.linalg.solve(K, G).T
    return [GKinv @ f for f in model.fs]


if __name__ == "__main__":
    key = jax.random.PRNGKey(0)
    k1, k2, k3, k4 = jax.random.split(key, 4)

    N, D, M = 64, 8, 32          # nsleep, feature dim, query batch
    x_fit = jax.random.normal(k1, (N, D), dtype=jnp.float32)
    f0 = jax.random.normal(k2, (N, 16), dtype=jnp.float32)   # variational params
    f1 = jax.random.normal(k3, (N, 1), dtype=jnp.float32)    # ELBO values
    x = jax.random.normal(k4, (M, D), dtype=jnp.float32)

    # Plain (centre_elbo=False) path, all fs
    model = KernelRidgeRegressor(centre_elbo=False)
    model.fit(x_fit, f0, f1)
    outs = [jax.block_until_ready(o) for o in model(x)]
    refs = _forward_ref(model, x)
    for o, r in zip(outs, refs):
        assert o.shape == r.shape
        err = float(jnp.max(jnp.abs(o - r)))
        assert err < 2e-3, err

    # Plain path, single index
    out0 = jax.block_until_ready(model(x, index=0))
    assert float(jnp.max(jnp.abs(out0 - refs[0]))) < 2e-3

    # centre_elbo path
    model_c = KernelRidgeRegressor(centre_elbo=True)
    model_c.fit(x_fit, f0, f1)
    elbo_mean = jnp.mean(f1, axis=0)
    K_ref = _rbf_ref(x_fit, x_fit, 0.0, 0.0) + 1e-2 * jnp.eye(N, dtype=jnp.float32)
    GKinv_ref = jnp.linalg.solve(K_ref, _rbf_ref(x_fit, x, 0.0, 0.0)).T
    ref_c = GKinv_ref @ (f1 - elbo_mean) + elbo_mean

    out_c = jax.block_until_ready(model_c(x, index=-1))
    assert float(jnp.max(jnp.abs(out_c - ref_c))) < 2e-3

    outs_c = [jax.block_until_ready(o) for o in model_c(x)]
    assert float(jnp.max(jnp.abs(outs_c[0] - GKinv_ref @ f0))) < 2e-3
    assert float(jnp.max(jnp.abs(outs_c[1] - ref_c))) < 2e-3

    print("KERNEL_OK")
</pallas_src>

<mosaic_0001>
module attributes {stable_mosaic.version = 11 : i64} {
  func.func @_rbf_kernel_body(%arg0: i32, %arg1: i32, %arg2: memref<3xf32, #tpu.memory_space<smem>>, %arg3: memref<128x8xf32, #tpu.memory_space<vmem>>, %arg4: memref<128x8xf32, #tpu.memory_space<vmem>>, %arg5: memref<128x128xf32, #tpu.memory_space<vmem>>) attributes {dimension_semantics = [#tpu.dimension_semantics<parallel>, #tpu.dimension_semantics<parallel>], iteration_bounds = array<i64: 1, 1>, scalar_prefetch = 0 : i64, scratch_operands = 0 : i64, tpu.core_type = #tpu.core_type<tc>, window_params = [{transform_indices = @transform_0, window_bounds = array<i64: 3>}, {transform_indices = @transform_1, window_bounds = array<i64: 128, 8>}, {transform_indices = @transform_2, window_bounds = array<i64: 128, 8>}, {transform_indices = @transform_3, window_bounds = array<i64: 128, 128>}]} {
    %c0 = arith.constant 0 : index
    %0 = memref.load %arg2[%c0] : memref<3xf32, #tpu.memory_space<smem>>
    %c1 = arith.constant 1 : index
    %1 = memref.load %arg2[%c1] : memref<3xf32, #tpu.memory_space<smem>>
    %c0_0 = arith.constant 0 : index
    %c0_1 = arith.constant 0 : index
    %2 = vector.load %arg3[%c0_0, %c0_1] : memref<128x8xf32, #tpu.memory_space<vmem>>, vector<128x8xf32>
    %3 = vector.broadcast %0 : f32 to vector<128x8xf32>
    %4 = arith.mulf %2, %3 : vector<128x8xf32>
    %c0_2 = arith.constant 0 : index
    %c0_3 = arith.constant 0 : index
    %5 = vector.load %arg4[%c0_2, %c0_3] : memref<128x8xf32, #tpu.memory_space<vmem>>, vector<128x8xf32>
    %6 = vector.broadcast %0 : f32 to vector<128x8xf32>
    %7 = arith.mulf %5, %6 : vector<128x8xf32>
    %8 = arith.mulf %4, %4 : vector<128x8xf32>
    %cst = arith.constant dense<0.000000e+00> : vector<128xf32>
    %9 = vector.multi_reduction <add>, %8, %cst [1] : vector<128x8xf32> to vector<128xf32>
    %10 = vector.shape_cast %9 : vector<128xf32> to vector<128x1xf32>
    %11 = arith.mulf %7, %7 : vector<128x8xf32>
    %cst_4 = arith.constant dense<0.000000e+00> : vector<128xf32>
    %12 = vector.multi_reduction <add>, %11, %cst_4 [1] : vector<128x8xf32> to vector<128xf32>
    %13 = vector.shape_cast %12 : vector<128xf32> to vector<128x1xf32>
    %cst_5 = arith.constant dense<0.000000e+00> : vector<128x128xf32>
    %14 = tpu.matmul %4, %7, %cst_5 {dimension_numbers = #tpu.dot_dimension_numbers<[1], [1], [0], [0], [0, 0, 1, 0], [], []>} : vector<128x8xf32>, vector<128x8xf32>, vector<128x128xf32> -> vector<128x128xf32>
    %cst_6 = arith.constant 2.000000e+00 : f32
    %15 = vector.broadcast %cst_6 : f32 to vector<128x128xf32>
    %16 = arith.mulf %15, %14 : vector<128x128xf32>
    %17 = vector.broadcast %10 : vector<128x1xf32> to vector<128x128xf32>
    %18 = arith.subf %17, %16 : vector<128x128xf32>
    %19 = tpu.transpose %13, [1, 0] : vector<128x1xf32> -> vector<1x128xf32>
    %20 = vector.broadcast %19 : vector<1x128xf32> to vector<128x128xf32>
    %21 = arith.addf %18, %20 : vector<128x128xf32>
    %cst_7 = arith.constant 0.000000e+00 : f32
    %22 = vector.broadcast %cst_7 : f32 to vector<128x128xf32>
    %23 = arith.maximumf %21, %22 : vector<128x128xf32>
    %24 = vector.broadcast %1 : f32 to vector<128x128xf32>
    %25 = arith.subf %24, %23 : vector<128x128xf32>
    %26 = math.exp %25 : vector<128x128xf32>
    %c0_8 = arith.constant 0 : index
    %c0_9 = arith.constant 0 : index
    %27 = vector.load %arg5[%c0_8, %c0_9] : memref<128x128xf32, #tpu.memory_space<vmem>>, vector<128x128xf32>
    tpu.vector_store %arg5[%c0_8, %c0_9], %26 {strides = array<i32>} : memref<128x128xf32, #tpu.memory_space<vmem>>, vector<128x128xf32>,
    %28 = arith.cmpi eq, %arg0, %arg1 : i32
    %29 = arith.extui %28 : i1 to i32
    %c0_i32 = arith.constant 0 : i32
    %30 = arith.cmpi ne, %29, %c0_i32 : i32
    scf.if %30 {
      %c2 = arith.constant 2 : index
      %31 = memref.load %arg2[%c2] : memref<3xf32, #tpu.memory_space<smem>>
      %32 = tpu.iota {dimensions = array<i32: 0>} : vector<128x128xi32>
      %33 = tpu.iota {dimensions = array<i32: 1>} : vector<128x128xi32>
      %c0_10 = arith.constant 0 : index
      %c0_11 = arith.constant 0 : index
      %34 = vector.load %arg5[%c0_10, %c0_11] : memref<128x128xf32, #tpu.memory_space<vmem>>, vector<128x128xf32>
      %35 = arith.cmpi eq, %32, %33 : vector<128x128xi32>
      %cst_12 = arith.constant 0.000000e+00 : f32
      %36 = vector.broadcast %31 : f32 to vector<128x128xf32>
      %37 = vector.broadcast %cst_12 : f32 to vector<128x128xf32>
      %38 = arith.select %35, %36, %37 : vector<128x128xi1>, vector<128x128xf32>
      %39 = arith.addf %34, %38 : vector<128x128xf32>
      %c0_13 = arith.constant 0 : index
      %c0_14 = arith.constant 0 : index
      %40 = vector.load %arg5[%c0_13, %c0_14] : memref<128x128xf32, #tpu.memory_space<vmem>>, vector<128x128xf32>
      tpu.vector_store %arg5[%c0_13, %c0_14], %39 {strides = array<i32>} : memref<128x128xf32, #tpu.memory_space<vmem>>, vector<128x128xf32>,
    } else {
    }
    return
  }
  func.func @transform_0(%arg0: i32, %arg1: i32) -> i32 {
    %c0_i32 = arith.constant 0 : i32
    %c0_i32_0 = arith.constant 0 : i32
    return %c0_i32 : i32
  }
  func.func @transform_1(%arg0: i32, %arg1: i32) -> (i32, i32) {
    %c0_i32 = arith.constant 0 : i32
    %c0_i32_0 = arith.constant 0 : i32
    return %arg0, %c0_i32 : i32, i32
  }
  func.func @transform_2(%arg0: i32, %arg1: i32) -> (i32, i32) {
    %c0_i32 = arith.constant 0 : i32
    %c0_i32_0 = arith.constant 0 : i32
    return %arg1, %c0_i32 : i32, i32
  }
  func.func @transform_3(%arg0: i32, %arg1: i32) -> (i32, i32) {
    %c0_i32 = arith.constant 0 : i32
    return %arg0, %arg1 : i32, i32
  }
}

</mosaic_0001>

<bundles_post_ra>
// kernel: tpu_custom_call.1
= control target key start
LH: loop header
LB: loop body
LE: loop exit
PB: predicated region body
PF: predicated region fallthrough
CT: control target
= control target key end

     0   :  { %8 = vsyncpa [#allocation4], 0  ;;  %s1537_s0 = inlined_call_operand.vmem [shape: f32[3], index: 0, kind: input, shape index: {}]   ;;  %s1538_s1 = inlined_call_operand.vmem [shape: f32[128,8], index: 1, kind: input, shape index: {}]   ;;  %s1539_s2 = inlined_call_operand.vmem [shape: f32[128,8], index: 2, kind: input, shape index: {}]   ;;  %s1540_s3 = inlined_call_operand.hbm [shape: f32[128,128], index: 3, kind: output, shape index: {}]  }
   0x1   :  { %9 = vsyncpa [#allocation3], 0  ;;  %s16_s14 = sshll.u32 %s1537_s0, 4  ;;  %s17_s14 = int_to_ptr.vmem [resolvable:$true] %s16_s14 }
   0x2   :  { %s974_s15 = scalar_lea.vmem %s17_s14, 16  ;;  %p979_p1 = scmp.lt.s32.totalorder %s17_s14, %s17_s14 }
   0x3   :  { %p975_p0 = scmp.ne.s32.totalorder %s17_s14, %s974_s15  ;;  %p980_p2 = scmp.lt.s32.totalorder %s974_s15, %s974_s15 }
   0x5   :  { %p981_p3 = por %p980_p2, %p979_p1 }
   0x7   :  { %p982_p4 = pnand %p981_p3, %p975_p0 }
   0x9   :  { %985 = shalt.err (!%p982_p4)
}
   0xa   :  { %s1012_s16 = smov [#allocation2]  }
   0xb   :  { %19 = dma.vmem_to_smem %s17_s14, 16, %s1012_s16, [#allocation4]  }
   0xc   :  { %1008 = dma.done.wait [#allocation4], 16  }
   0xd   :  { %1009 = vsyncadd [#allocation4], 4294967280 }
   0xe   :  { %27 = sfence }
   0xf   :  { %s28_s17 = sld [smem:[#allocation2]]  ;;  %v63_v0 = vld [vmem:[%s1539_s2] sm:$0xff]  ;;  %v64_v1 = vld [vmem:[%s1539_s2 + $0x8] sm:$0xff]  ;;  %v65_v2 = vld [vmem:[%s1539_s2 + $0x10] sm:$0xff]  ;;  %vm111_vm0 = vcmask 64512   ;;  %s752_s24 = sld [smem:[#allocation2 + $0x1]] }
  0x10   :  { %v66_v3 = vld [vmem:[%s1539_s2 + $0x18] sm:$0xff]  ;;  %vm1059_vm1 = vmpackc.low %vm111_vm0, %vm111_vm0  ;;  %v67_v13 = vld [vmem:[%s1539_s2 + $0x20] sm:$0xff]  ;;  %s1013_s25 = smov [#allocation5]  }
  0x11   :  { %v68_v16 = vld [vmem:[%s1539_s2 + $0x28] sm:$0xff]  ;;  %v69_v24 = vld [vmem:[%s1539_s2 + $0x30] sm:$0xff]  ;;  %v70_v25 = vld [vmem:[%s1539_s2 + $0x38] sm:$0xff]  ;;  %s740_s26 = sshll.u32 %s1013_s25, 4  ;;  %s741_s26 = int_to_ptr.vmem [resolvable:$true] %s740_s26 }
  0x12   :  { %v30_v28 = vld [vmem:[%s1538_s1] sm:$0xff]  ;;  %v72_v35 = vld [vmem:[%s1539_s2 + $0x48] sm:$0xff]  ;;  %v73_v43 = vld [vmem:[%s1539_s2 + $0x50] sm:$0xff]  ;;  %p991_p6 = scmp.lt.s32.totalorder %s741_s26, %s741_s26 }
  0x13   :  { %v38_v32 = vld [vmem:[%s1538_s1 + $0x40] sm:$0xff]  ;;  %v74_v44 = vld [vmem:[%s1539_s2 + $0x58] sm:$0xff]  ;;  %v76_v53 = vld [vmem:[%s1539_s2 + $0x68] sm:$0xff] }
  0x14   :  { %v71_v34 = vld [vmem:[%s1539_s2 + $0x40] sm:$0xff]  ;;  %v77_v60 = vld [vmem:[%s1539_s2 + $0x70] sm:$0xff]  ;;  %v78_v61 = vld [vmem:[%s1539_s2 + $0x78] sm:$0xff] }
  0x15   :  { %v1051_v4 = vstv %s28_s17  ;;  %v75_v52 = vld [vmem:[%s1539_s2 + $0x60] sm:$0xff]  ;;  %s986_s2 = scalar_lea.vmem %s741_s26, 2048 }
  0x16   :  { %v79_v5 = vmul.f32 %v63_v0, %v1051_v4  ;;  %v80_v6 = vmul.f32 %v64_v1, %v1051_v4  ;;  %v81_v7 = vmul.f32 %v65_v2, %v1051_v4  ;;  %v82_v8 = vmul.f32 %v66_v3, %v1051_v4  ;;  %p987_p5 = scmp.ne.s32.totalorder %s741_s26, %s986_s2  ;;  %p992_p7 = scmp.lt.s32.totalorder %s986_s2, %s986_s2 }
  0x17   :  { %v83_v20 = vmul.f32 %v67_v13, %v1051_v4  ;;  %v84_v21 = vmul.f32 %v68_v16, %v1051_v4  ;;  %v85_v30 = vmul.f32 %v69_v24, %v1051_v4  ;;  %v86_v31 = vmul.f32 %v70_v25, %v1051_v4  ;;  %v32_v13 = vld [vmem:[%s1538_s1 + $0x10] sm:$0xff] }
  0x18   :  { %v874_v10 = vpack.c.bf16 %v80_v6, %v79_v5  ;;  %v160_v11 = vmul.f32 %v79_v5, %v79_v5  ;;  %v880_v12 = vpack.c.bf16 %v82_v8, %v81_v7  ;;  %v161_v14 = vmul.f32 %v80_v6, %v80_v6  ;;  %v31_v6 = vld [vmem:[%s1538_s1 + $0x8] sm:$0xff]  ;;  %p993_p8 = por %p992_p7, %p991_p6 }
  0x19   :  { %v162_v15 = vmul.f32 %v81_v7, %v81_v7  ;;  %v163_v18 = vmul.f32 %v82_v8, %v82_v8  ;;  %v164_v23 = vmul.f32 %v83_v20, %v83_v20  ;;  %v165_v27 = vmul.f32 %v84_v21, %v84_v21 }
  0x1a   :  { %876 = vmatprep.subr.msk.bf16.mxu0 %vm1059_vm1, %v874_v10  ;;  %922 = vmatprep.subr.msk.bf16.mxu1 %vm1059_vm1, %v874_v10  ;;  %v176_v17 = vsel %vm111_vm0, %v160_v11, 0.0  ;;  %v179_v22 = vsel %vm111_vm0, %v161_v14, 0.0  ;;  %v886_v29 = vpack.c.bf16 %v84_v21, %v83_v20  ;;  %v166_v37 = vmul.f32 %v85_v30, %v85_v30  ;;  %v33_v14 = vld [vmem:[%s1538_s1 + $0x18] sm:$0xff]  ;;  %p994_p9 = pnand %p993_p8, %p987_p5 }
  0x1b   :  { %879 = vmatpush3.bf16.xpose.msk.msra.mxu0 %vm1059_vm1, %v874_v10  ;;  %930 = vmatpush3.bf16.xpose.msk.msra.mxu1 %vm1059_vm1, %v874_v10  ;;  %v182_v19 = vsel %vm111_vm0, %v162_v15, 0.0  ;;  %v185_v26 = vsel %vm111_vm0, %v163_v18, 0.0  ;;  %v188_v33 = vsel %vm111_vm0, %v164_v23, 0.0  ;;  %v191_v36 = vsel %vm111_vm0, %v165_v27, 0.0  ;;  %v35_v23 = vld [vmem:[%s1538_s1 + $0x28] sm:$0xff] }
  0x1c   :  { %177 = vadd.xlane.f32.xlu0 %v176_v17  ;;  %882 = vmatprep.subr.msk.bf16.mxu0 %vm1059_vm1, %v880_v12  ;;  %v167_v38 = vmul.f32 %v86_v31, %v86_v31  ;;  %v1110_v39 = vmul.f32 %v1051_v4, %v30_v28  ;;  %v1117_v40 = vmul.f32 %v1051_v4, %v38_v32  ;;  %v194_v45 = vsel %vm111_vm0, %v166_v37, 0.0 }
  0x1d   :  { %923 = vmatprep.subr.msk.bf16.mxu1 %vm1059_vm1, %v880_v12  ;;  %183 = vadd.xlane.f32.xlu1 %v182_v19  ;;  %v87_v41 = vmul.f32 %v71_v34, %v1051_v4  ;;  %v88_v42 = vmul.f32 %v72_v35, %v1051_v4  ;;  %v892_v49 = vpack.c.bf16 %v86_v31, %v85_v30  ;;  %v36_v30 = vld [vmem:[%s1538_s1 + $0x30] sm:$0xff]  ;;  %v37_v31 = vld [vmem:[%s1538_s1 + $0x38] sm:$0xff] }
  0x1e   :  { %v197_v46 = vsel %vm111_vm0, %v167_v38, 0.0  ;;  %850 = vmatprep.mubr.msk.f32.mxu0 %vm111_vm0, %v1110_v39  ;;  %862 = vmatprep.mubr.msk.f32.mxu1 %vm111_vm0, %v1117_v40  ;;  %v89_v50 = vmul.f32 %v73_v43, %v1051_v4  ;;  %v90_v51 = vmul.f32 %v74_v44, %v1051_v4  ;;  %v91_v58 = vmul.f32 %v75_v52, %v1051_v4 }
  0x1f   :  { %v168_v47 = vmul.f32 %v87_v41, %v87_v41  ;;  %v169_v48 = vmul.f32 %v88_v42, %v88_v42  ;;  %v92_v59 = vmul.f32 %v76_v53, %v1051_v4  ;;  %v898_v2 = vpack.c.bf16 %v88_v42, %v87_v41 }
  0x20   :  { %180 = vadd.xlane.f32.xlu0 %v179_v22  ;;  %v170_v56 = vmul.f32 %v89_v50, %v89_v50  ;;  %v171_v57 = vmul.f32 %v90_v51, %v90_v51  ;;  %v172_v0 = vmul.f32 %v91_v58, %v91_v58  ;;  %v1166_v3 = vmul.f32 %v77_v60, %v1051_v4  ;;  %v34_v22 = vld [vmem:[%s1538_s1 + $0x20] sm:$0xff] }
  0x21   :  { %186 = vadd.xlane.f32.xlu1 %v185_v26  ;;  %v200_v54 = vsel %vm111_vm0, %v168_v47, 0.0  ;;  %v203_v55 = vsel %vm111_vm0, %v169_v48, 0.0  ;;  %v173_v1 = vmul.f32 %v92_v59, %v92_v59  ;;  %v1169_v5 = vmul.f32 %v78_v61, %v1051_v4  ;;  %v41_v47 = vld [vmem:[%s1538_s1 + $0x58] sm:$0xff] }
  0x22   :  { %v206_v62 = vsel %vm111_vm0, %v170_v56, 0.0  ;;  %v209_v63 = vsel %vm111_vm0, %v171_v57, 0.0  ;;  %v212_v7 = vsel %vm111_vm0, %v172_v0, 0.0  ;;  %v174_v10 = vmul.f32 %v1166_v3, %v1166_v3  ;;  %v43_v56 = vld [vmem:[%s1538_s1 + $0x68] sm:$0xff] }
  0x23   :  { %885 = vmatpush3.bf16.xpose.msk.msra.mxu0 %vm1059_vm1, %v880_v12  ;;  %931 = vmatpush3.bf16.xpose.msk.msra.mxu1 %vm1059_vm1, %v880_v12  ;;  %v215_v8 = vsel %vm111_vm0, %v173_v1, 0.0  ;;  %v175_v11 = vmul.f32 %v1169_v5, %v1169_v5  ;;  %v1189_v12 = vmul.f32 %v1051_v4, %v31_v6  ;;  %v95_v17 = vmul.f32 %v1110_v39, %v1110_v39  ;;  %v39_v39 = vld [vmem:[%s1538_s1 + $0x48] sm:$0xff] }
  0x24   :  { %888 = vmatprep.subr.msk.bf16.mxu0 %vm1059_vm1, %v886_v29  ;;  %924 = vmatprep.subr.msk.bf16.mxu1 %vm1059_vm1, %v886_v29  ;;  %v218_v15 = vsel %vm111_vm0, %v174_v10, 0.0  ;;  %v904_v19 = vpack.c.bf16 %v90_v51, %v89_v50  ;;  %v1204_v20 = vmul.f32 %v1051_v4, %v32_v13  ;;  %v1207_v21 = vmul.f32 %v1051_v4, %v33_v14 }
  0x25   :  { %189 = vadd.xlane.f32.xlu0 %v188_v33  ;;  %192 = vadd.xlane.f32.xlu1 %v191_v36  ;;  %v221_v16 = vsel %vm111_vm0, %v175_v11, 0.0  ;;  %v96_v18 = vmul.f32 %v1189_v12, %v1189_v12  ;;  %v112_v24 = vsel %vm111_vm0, %v95_v17, 0.0  ;;  %v1230_v28 = vmul.f32 %v1051_v4, %v34_v22 }
  0x26   :  { %v97_v25 = vmul.f32 %v1204_v20, %v1204_v20  ;;  %v98_v27 = vmul.f32 %v1207_v21, %v1207_v21  ;;  %v910_v36 = vpack.c.bf16 %v92_v59, %v91_v58  ;;  %v1248_v37 = vmul.f32 %v1051_v4, %v36_v30 }
  0x27   :  { %v115_v26 = vsel %vm111_vm0, %v96_v18, 0.0  ;;  %v99_v33 = vmul.f32 %v1230_v28, %v1230_v28  ;;  %v1251_v38 = vmul.f32 %v1051_v4, %v37_v31  ;;  %v916_v52 = vpack.c.bf16 %v1169_v5, %v1166_v3 }
  0x28   :  { %v118_v32 = vsel %vm111_vm0, %v97_v25, 0.0  ;;  %v121_v34 = vsel %vm111_vm0, %v98_v27, 0.0  ;;  %v101_v42 = vmul.f32 %v1248_v37, %v1248_v37  ;;  %v60_v61 = vmul.f32 %v1051_v4, %v43_v56 }
  0x29   :  { %195 = vadd.xlane.f32.xlu0 %v194_v45  ;;  %198 = vadd.xlane.f32.xlu1 %v197_v46  ;;  %v124_v41 = vsel %vm111_vm0, %v99_v33, 0.0  ;;  %v102_v44 = vmul.f32 %v1251_v38, %v1251_v38  ;;  %v56_v45 = vmul.f32 %v1051_v4, %v39_v39  ;;  %v40_v46 = vld [vmem:[%s1538_s1 + $0x50] sm:$0xff]  ;;  %v1383_v56 = vstv %s752_s24 }
  0x2a   :  { %v130_v48 = vsel %vm111_vm0, %v101_v42, 0.0  ;;  %v57_v53 = vmul.f32 %v1051_v4, %v40_v46  ;;  %v108_v3 = vmul.f32 %v60_v61, %v60_v61 }
  0x2b   :  { %891 = vmatpush3.bf16.xpose.msk.msra.mxu0 %vm1059_vm1, %v886_v29  ;;  %932 = vmatpush3.bf16.xpose.msk.msra.mxu1 %vm1059_vm1, %v886_v29  ;;  %v1233_v29 = vmul.f32 %v1051_v4, %v35_v23  ;;  %v133_v50 = vsel %vm111_vm0, %v102_v44, 0.0  ;;  %v104_v51 = vmul.f32 %v56_v45, %v56_v45 }
  0x2c   :  { %894 = vmatprep.subr.msk.bf16.mxu0 %vm1059_vm1, %v892_v49  ;;  %925 = vmatprep.subr.msk.bf16.mxu1 %vm1059_vm1, %v892_v49  ;;  %v105_v57 = vmul.f32 %v57_v53, %v57_v53  ;;  %v151_v10 = vsel %vm111_vm0, %v108_v3, 0.0 }
  0x2d   :  { %201 = vadd.xlane.f32.xlu0 %v200_v54  ;;  %204 = vadd.xlane.f32.xlu1 %v203_v55  ;;  %v100_v35 = vmul.f32 %v1233_v29, %v1233_v29  ;;  %v58_v54 = vmul.f32 %v1051_v4, %v41_v47  ;;  %v42_v55 = vld [vmem:[%s1538_s1 + $0x60] sm:$0xff]  ;;  %v139_v58 = vsel %vm111_vm0, %v104_v51, 0.0 }
  0x2e   :  { %v59_v60 = vmul.f32 %v1051_v4, %v42_v55  ;;  %v142_v0 = vsel %vm111_vm0, %v105_v57, 0.0 }
  0x2f   :  { %v127_v43 = vsel %vm111_vm0, %v100_v35, 0.0  ;;  %v106_v59 = vmul.f32 %v58_v54, %v58_v54 }
  0x30   :  { %v107_v1 = vmul.f32 %v59_v60, %v59_v60 }
  0x31   :  { %207 = vadd.xlane.f32.xlu0 %v206_v62  ;;  %210 = vadd.xlane.f32.xlu1 %v209_v63  ;;  %v44_v62 = vld [vmem:[%s1538_s1 + $0x70] sm:$0xff]  ;;  %v45_v63 = vld [vmem:[%s1538_s1 + $0x78] sm:$0xff]  ;;  %s785_s1 = sld [smem:[#allocation2 + $0x2]] }
  0x32   :  { %v61_v5 = vmul.f32 %v1051_v4, %v44_v62  ;;  %v62_v6 = vmul.f32 %v1051_v4, %v45_v63 }
  0x33   :  { %897 = vmatpush3.bf16.xpose.msk.msra.mxu0 %vm1059_vm1, %v892_v49  ;;  %933 = vmatpush3.bf16.xpose.msk.msra.mxu1 %vm1059_vm1, %v892_v49  ;;  %v103_v49 = vmul.f32 %v1117_v40, %v1117_v40 }
  0x34   :  { %900 = vmatprep.subr.msk.bf16.mxu0 %vm1059_vm1, %v898_v2  ;;  %926 = vmatprep.subr.msk.bf16.mxu1 %vm1059_vm1, %v898_v2  ;;  %v110_v11 = vmul.f32 %v62_v6, %v62_v6 }
  0x35   :  { %213 = vadd.xlane.f32.xlu0 %v212_v7  ;;  %216 = vadd.xlane.f32.xlu1 %v215_v8  ;;  %v136_v40 = vsel %vm111_vm0, %v103_v49, 0.0  ;;  %v148_v7 = vsel %vm111_vm0, %v107_v1, 0.0  ;;  %v109_v8 = vmul.f32 %v61_v5, %v61_v5 }
  0x36   :  { %v157_v4 = vsel %vm111_vm0, %v110_v11, 0.0 }
  0x37   :  { %v154_v13 = vsel %vm111_vm0, %v109_v8, 0.0  ;;  %v1381_v55 = vstv %s785_s1 }
  0x39   :  { %219 = vadd.xlane.f32.xlu0 %v218_v15  ;;  %222 = vadd.xlane.f32.xlu1 %v221_v16 }
  0x3b   :  { %903 = vmatpush3.bf16.xpose.msk.msra.mxu0 %vm1059_vm1, %v898_v2  ;;  %934 = vmatpush3.bf16.xpose.msk.msra.mxu1 %vm1059_vm1, %v898_v2  ;;  %v145_v2 = vsel %vm111_vm0, %v106_v59, 0.0 }
  0x3c   :  { %906 = vmatprep.subr.msk.bf16.mxu0 %vm1059_vm1, %v904_v19  ;;  %927 = vmatprep.subr.msk.bf16.mxu1 %vm1059_vm1, %v904_v19 }
  0x3d   :  { %113 = vadd.xlane.f32.xlu0 %v112_v24  ;;  %116 = vadd.xlane.f32.xlu1 %v115_v26 }
  0x41   :  { %119 = vadd.xlane.f32.xlu0 %v118_v32  ;;  %122 = vadd.xlane.f32.xlu1 %v121_v34 }
  0x43   :  { %909 = vmatpush3.bf16.xpose.msk.msra.mxu0 %vm1059_vm1, %v904_v19  ;;  %935 = vmatpush3.bf16.xpose.msk.msra.mxu1 %vm1059_vm1, %v904_v19 }
  0x44   :  { %912 = vmatprep.subr.msk.bf16.mxu0 %vm1059_vm1, %v910_v36  ;;  %928 = vmatprep.subr.msk.bf16.mxu1 %vm1059_vm1, %v910_v36 }
  0x45   :  { %125 = vadd.xlane.f32.xlu0 %v124_v41  ;;  %128 = vadd.xlane.f32.xlu1 %v127_v43 }
  0x49   :  { %131 = vadd.xlane.f32.xlu0 %v130_v48  ;;  %134 = vadd.xlane.f32.xlu1 %v133_v50 }
  0x4b   :  { %915 = vmatpush3.bf16.xpose.msk.msra.mxu0 %vm1059_vm1, %v910_v36  ;;  %936 = vmatpush3.bf16.xpose.msk.msra.mxu1 %vm1059_vm1, %v910_v36 }
  0x4c   :  { %918 = vmatprep.subr.msk.bf16.mxu0 %vm1059_vm1, %v916_v52  ;;  %929 = vmatprep.subr.msk.bf16.mxu1 %vm1059_vm1, %v916_v52 }
  0x4d   :  { %137 = vadd.xlane.f32.xlu0 %v136_v40  ;;  %140 = vadd.xlane.f32.xlu1 %v139_v58 }
  0x51   :  { %143 = vadd.xlane.f32.xlu0 %v142_v0  ;;  %146 = vadd.xlane.f32.xlu1 %v145_v2 }
  0x53   :  { %921 = vmatpush3.bf16.xpose.msk.msra.mxu0 %vm1059_vm1, %v916_v52  ;;  %937 = vmatpush3.bf16.xpose.msk.msra.mxu1 %vm1059_vm1, %v916_v52 }
  0x55   :  { %149 = vadd.xlane.f32.xlu0 %v148_v7  ;;  %152 = vadd.xlane.f32.xlu1 %v151_v10 }
  0x59   :  { %155 = vadd.xlane.f32.xlu0 %v154_v13  ;;  %158 = vadd.xlane.f32.xlu1 %v157_v4 }
  0x5a   :  { %851 = vmatmul.mubr.msk.f32.vlgmr.msra.gmra.mrb[0].mxu0 %vm111_vm0, %v1189_v12  ;;  %863 = vmatmul.mubr.msk.f32.vlgmr.msra.gmra.mrb[0].mxu1 %vm111_vm0, %v56_v45 }
  0x5b   :  { %853 = vmatprep.mubr.msk.f32.mxu0 %vm111_vm0, %v1204_v20  ;;  %865 = vmatprep.mubr.msk.f32.mxu1 %vm111_vm0, %v57_v53 }
  0x5e   :  { %854 = vmatmul.mubr.msk.f32.gmra.mrb[2].mxu0 %vm111_vm0, %v1207_v21  ;;  %866 = vmatmul.mubr.msk.f32.gmra.mrb[2].mxu1 %vm111_vm0, %v58_v54 }
  0x5f   :  { %856 = vmatprep.mubr.msk.f32.mxu0 %vm111_vm0, %v1230_v28  ;;  %868 = vmatprep.mubr.msk.f32.mxu1 %vm111_vm0, %v59_v60 }
  0x62   :  { %857 = vmatmul.mubr.msk.f32.gmra.mrb[4].mxu0 %vm111_vm0, %v1233_v29  ;;  %869 = vmatmul.mubr.msk.f32.gmra.mrb[4].mxu1 %vm111_vm0, %v60_v61 }
  0x63   :  { %859 = vmatprep.mubr.msk.f32.mxu0 %vm111_vm0, %v1248_v37  ;;  %871 = vmatprep.mubr.msk.f32.mxu1 %vm111_vm0, %v61_v5  ;;  %v529_v37 = vlaneseq }
  0x65   :  { %v1364_v41 = vshrl.u32 %v529_v37, 7  ;;  %v1370_v46 = vand.u32 127, %v529_v37 }
  0x66   :  { %860 = vmatmul.mubr.msk.f32.gmra.mrb[6].mxu0 %vm111_vm0, %v1251_v38  ;;  %872 = vmatmul.mubr.msk.f32.gmra.mrb[6].mxu1 %vm111_vm0, %v62_v6 }
  0x67   :  { %v639_v42 = vadd.s32 24, %v1364_v41  ;;  %v638_v44 = vadd.s32 16, %v1364_v41  ;;  %v646_v47 = vadd.s32 80, %v1364_v41  ;;  %v647_v48 = vadd.s32 88, %v1364_v41 }
  0x68   :  { %v641_v49 = vadd.s32 40, %v1364_v41  ;;  %v640_v50 = vadd.s32 32, %v1364_v41  ;;  %v649_v51 = vadd.s32 104, %v1364_v41  ;;  %v531_v52 = vsub.s32 0, %v1364_v41 }
  0x69   :  { %vm673_vm2 = vcmp.eq.s32.totalorder %v639_v42, %v1370_v46  ;;  %vm672_vm3 = vcmp.eq.s32.totalorder %v638_v44, %v1370_v46  ;;  %v648_v53 = vadd.s32 96, %v1364_v41  ;;  %vm680_vm4 = vcmp.eq.s32.totalorder %v646_v47, %v1370_v46 }
  0x6a   :  { %v1386_v40 = vsel %vm673_vm2, %v1381_v55, 0.0  ;;  %vm681_vm5 = vcmp.eq.s32.totalorder %v647_v48, %v1370_v46  ;;  %v1391_v60 = vsel %vm672_vm3, %v1381_v55, 0.0  ;;  %vm675_vm6 = vcmp.eq.s32.totalorder %v641_v49, %v1370_v46 }
  0x6b   :  { %vm674_vm7 = vcmp.eq.s32.totalorder %v640_v50, %v1370_v46  ;;  %vm683_vm8 = vcmp.eq.s32.totalorder %v649_v51, %v1370_v46  ;;  %vm682_vm9 = vcmp.eq.s32.totalorder %v648_v53, %v1370_v46  ;;  %v1402_v5 = vsel %vm680_vm4, %v1381_v55, 0.0 }
  0x6c   :  { %v1407_v6 = vsel %vm681_vm5, %v1381_v55, 0.0  ;;  %v1411_v10 = vsel %vm675_vm6, %v1381_v55, 0.0  ;;  %v1414_v11 = vsel %vm683_vm8, %v1381_v55, 0.0  ;;  %vm670_vm10 = vcmp.eq.s32.totalorder %v1364_v41, %v1370_v46 }
  0xa9   :  { %v178_v9 = vpop.xlane.xlu0 %177 }
  0xaa   :  { %497 = vxpose.xlu0.b32.start [1/16] (narrow) %v178_v9, 8  ;;  %v184_v14 = vpop.xlane.xlu1 %183 }
  0xad   :  { %v181_v12 = vpop.xlane.xlu0 %180 }
  0xae   :  { %498 = vxpose.xlu0.b32.cont [2/16] (narrow) %v181_v12, 8  ;;  %v187_v15 = vpop.xlane.xlu1 %186 }
  0xb2   :  { %499 = vxpose.xlu0.b32.cont [3/16] (narrow) %v184_v14, 8  ;;  %v190_v16 = vpop.xlane.xlu0 %189  ;;  %v193_v17 = vpop.xlane.xlu1 %192  ;;  %v1421_v14 = vsel %vm674_vm7, %v1381_v55, 0.0 }
  0xb6   :  { %500 = vxpose.xlu0.b32.cont [4/16] (narrow) %v187_v15, 8  ;;  %v196_v18 = vpop.xlane.xlu0 %195  ;;  %v199_v19 = vpop.xlane.xlu1 %198  ;;  %v1424_v15 = vsel %vm682_vm9, %v1381_v55, 0.0 }
  0xba   :  { %501 = vxpose.xlu0.b32.cont [5/16] (narrow) %v190_v16, 8  ;;  %v202_v20 = vpop.xlane.xlu0 %201  ;;  %v205_v21 = vpop.xlane.xlu1 %204 }
  0xbe   :  { %502 = vxpose.xlu0.b32.cont [6/16] (narrow) %v193_v17, 8  ;;  %v208_v22 = vpop.xlane.xlu0 %207  ;;  %v211_v23 = vpop.xlane.xlu1 %210 }
  0xc2   :  { %503 = vxpose.xlu0.b32.cont [7/16] (narrow) %v196_v18, 8  ;;  %v214_v24 = vpop.xlane.xlu0 %213  ;;  %v217_v25 = vpop.xlane.xlu1 %216 }
  0xc6   :  { %504 = vxpose.xlu0.b32.cont [8/16] (narrow) %v199_v19, 8  ;;  %v220_v26 = vpop.xlane.xlu0 %219  ;;  %v223_v27 = vpop.xlane.xlu1 %222 }
  0xca   :  { %505 = vxpose.xlu0.b32.cont [9/16] (narrow) %v202_v20, 8  ;;  %v1342_v28 = vpop.xlane.xlu0 %113  ;;  %v1348_v31 = vpop.xlane.xlu1 %116 }
  0xce   :  { %506 = vxpose.xlu0.b32.cont [10/16] (narrow) %v205_v21, 8  ;;  %v1344_v29 = vpop.xlane.xlu0 %119  ;;  %v1352_v33 = vpop.xlane.xlu1 %122 }
  0xd2   :  { %507 = vxpose.xlu0.b32.cont [11/16] (narrow) %v208_v22, 8  ;;  %v1346_v30 = vpop.xlane.xlu0 %125  ;;  %v1356_v35 = vpop.xlane.xlu1 %128 }
  0xd6   :  { %508 = vxpose.xlu0.b32.cont [12/16] (narrow) %v211_v23, 8  ;;  %v1350_v32 = vpop.xlane.xlu0 %131  ;;  %v1360_v38 = vpop.xlane.xlu1 %134 }
  0xda   :  { %509 = vxpose.xlu0.b32.cont [13/16] (narrow) %v214_v24, 8  ;;  %v1354_v34 = vpop.xlane.xlu0 %137  ;;  %v141_v43 = vpop.xlane.xlu1 %140 }
  0xde   :  { %510 = vxpose.xlu0.b32.cont [14/16] (narrow) %v217_v25, 8  ;;  %v1358_v36 = vpop.xlane.xlu0 %143  ;;  %v147_v57 = vpop.xlane.xlu1 %146 }
  0xe2   :  { %511 = vxpose.xlu0.b32.cont [15/16] (narrow) %v220_v26, 8  ;;  %v1362_v39 = vpop.xlane.xlu0 %149 }
  0xe6   :  { %512 = vxpose.xlu0.b32.end [16/16] (narrow) %v223_v27, 8  ;;  %v1368_v45 = vpop.xlane.xlu0 %155 }
 0x12a   :  { %v513_v54 = vpop.trf.xlu0 }
 0x12b   :  { %v1396_v1 = vrot.slane %v513_v54, %v531_v52 }
 0x12d   :  { %v852_v58 = vpop.f32.mrb[0].mxu0  ;;  %v864_v59 = vpop.f32.mrb[0].mxu1 }
 0x12e   :  { %v466_v61 = vmul.f32 2.0, %v852_v58  ;;  %v474_v62 = vmul.f32 2.0, %v864_v59  ;;  %v386_v63 = vpop.f32.mrb[1].mxu0  ;;  %v426_v0 = vpop.f32.mrb[1].mxu1 }
 0x12f   :  { %v465_v2 = vmul.f32 2.0, %v386_v63  ;;  %v473_v3 = vmul.f32 2.0, %v426_v0 }
 0x130   :  { %v482_v7 = vsub.f32 %v1348_v31, %v466_v61  ;;  %v490_v8 = vsub.f32 %v141_v43, %v474_v62 }
 0x131   :  { %v481_v13 = vsub.f32 %v1342_v28, %v465_v2  ;;  %v489_v4 = vsub.f32 %v1354_v34, %v473_v3  ;;  %v855_v9 = vpop.f32.mrb[2].mxu0  ;;  %v867_v12 = vpop.f32.mrb[2].mxu1 }
 0x132   :  { %v468_v16 = vmul.f32 2.0, %v855_v9  ;;  %v476_v17 = vmul.f32 2.0, %v867_v12  ;;  %v396_v18 = vpop.f32.mrb[3].mxu0  ;;  %v436_v19 = vpop.f32.mrb[3].mxu1  ;;  %v1427_v20 = vadd.f32 %v1396_v1, %v482_v7  ;;  %v1430_v21 = vadd.f32 %v1396_v1, %v490_v8 }
 0x133   :  { %v467_v22 = vmul.f32 2.0, %v396_v18  ;;  %v475_v23 = vmul.f32 2.0, %v436_v19  ;;  %v1433_v24 = vadd.f32 %v1396_v1, %v481_v13  ;;  %v1436_v25 = vadd.f32 %v1396_v1, %v489_v4  ;;  %v153_v28 = vpop.xlane.xlu1 %152 }
 0x134   :  { %v484_v26 = vsub.f32 %v1352_v33, %v468_v16  ;;  %v492_v27 = vsub.f32 %v147_v57, %v476_v17  ;;  %v550_v31 = vmax.f32 %v1427_v20, 0.0  ;;  %v558_v34 = vmax.f32 %v1430_v21, 0.0 }
 0x135   :  { %v483_v37 = vsub.f32 %v1344_v29, %v467_v22  ;;  %v491_v42 = vsub.f32 %v1358_v36, %v475_v23  ;;  %v858_v43 = vpop.f32.mrb[4].mxu0  ;;  %v870_v44 = vpop.f32.mrb[4].mxu1  ;;  %v549_v47 = vmax.f32 %v1433_v24, 0.0  ;;  %v557_v48 = vmax.f32 %v1436_v25, 0.0 }
 0x136   :  { %v536_v49 = vadd.f32 %v1396_v1, %v484_v26  ;;  %v544_v33 = vadd.f32 %v1396_v1, %v492_v27  ;;  %v470_v50 = vmul.f32 2.0, %v858_v43  ;;  %v478_v51 = vmul.f32 2.0, %v870_v44  ;;  %v406_v52 = vpop.f32.mrb[5].mxu0  ;;  %v446_v53 = vpop.f32.mrb[5].mxu1 }
 0x137   :  { %v535_v54 = vadd.f32 %v1396_v1, %v483_v37  ;;  %v543_v29 = vadd.f32 %v1396_v1, %v491_v42  ;;  %v469_v57 = vmul.f32 2.0, %v406_v52  ;;  %v477_v36 = vmul.f32 2.0, %v446_v53  ;;  %v159_v52 = vpop.xlane.xlu1 %158 }
 0x138   :  { %v552_v58 = vmax.f32 %v536_v49, 0.0  ;;  %v560_v59 = vmax.f32 %v544_v33, 0.0  ;;  %v486_v61 = vsub.f32 %v1356_v35, %v470_v50  ;;  %v494_v62 = vsub.f32 %v153_v28, %v478_v51 }
 0x139   :  { %v551_v63 = vmax.f32 %v535_v54, 0.0  ;;  %v559_v0 = vmax.f32 %v543_v29, 0.0  ;;  %v485_v2 = vsub.f32 %v1346_v30, %v469_v57  ;;  %v493_v3 = vsub.f32 %v1362_v39, %v477_v36  ;;  %v861_v7 = vpop.f32.mrb[6].mxu0  ;;  %v873_v8 = vpop.f32.mrb[6].mxu1 }
 0x13a   :  { %v569_v13 = vsub.f32 %v1383_v56, %v552_v58  ;;  %v577_v4 = vsub.f32 %v1383_v56, %v560_v59  ;;  %v538_v9 = vadd.f32 %v1396_v1, %v486_v61  ;;  %v546_v12 = vadd.f32 %v1396_v1, %v494_v62  ;;  %v416_v16 = vpop.f32.mrb[7].mxu0  ;;  %v456_v17 = vpop.f32.mrb[7].mxu1 }
 0x13b   :  { %v568_v35 = vsub.f32 %v1383_v56, %v551_v63  ;;  %v576_v18 = vsub.f32 %v1383_v56, %v559_v0  ;;  %v537_v30 = vadd.f32 %v1396_v1, %v485_v2  ;;  %v545_v39 = vadd.f32 %v1396_v1, %v493_v3 }
 0x13c   :  { %v588_v19 = vmul.f32 1.442695, %v569_v13  ;;  %v604_v22 = vmul.f32 1.442695, %v577_v4  ;;  %v554_v23 = vmax.f32 %v538_v9, 0.0  ;;  %v562_v26 = vmax.f32 %v546_v12, 0.0 }
 0x13d   :  { %v586_v27 = vmul.f32 1.442695, %v568_v35  ;;  %v602_v28 = vmul.f32 1.442695, %v576_v18  ;;  %v553_v37 = vmax.f32 %v537_v30, 0.0  ;;  %v561_v42 = vmax.f32 %v545_v39, 0.0 }
 0x13e   :  { %942 = vpow2.f32 %v588_v19  ;;  %v571_v43 = vsub.f32 %v1383_v56, %v554_v23  ;;  %v579_v44 = vsub.f32 %v1383_v56, %v562_v26  ;;  %v472_v49 = vmul.f32 2.0, %v861_v7 }
 0x13f   :  { %944 = vpow2.f32 %v586_v27  ;;  %v570_v33 = vsub.f32 %v1383_v56, %v553_v37  ;;  %v578_v50 = vsub.f32 %v1383_v56, %v561_v42  ;;  %v480_v51 = vmul.f32 2.0, %v873_v8 }
 0x140   :  { %946 = vpow2.f32 %v602_v28  ;;  %v592_v53 = vmul.f32 1.442695, %v571_v43  ;;  %v608_v54 = vmul.f32 1.442695, %v579_v44  ;;  %v488_v29 = vsub.f32 %v1360_v38, %v472_v49 }
 0x141   :  { %948 = vpow2.f32 %v604_v22  ;;  %v590_v57 = vmul.f32 1.442695, %v570_v33  ;;  %v606_v36 = vmul.f32 1.442695, %v578_v50  ;;  %v471_v58 = vmul.f32 2.0, %v416_v16 }
 0x142   :  { %950 = vpow2.f32 %v592_v53  ;;  %v540_v59 = vadd.f32 %v1396_v1, %v488_v29  ;;  %v479_v61 = vmul.f32 2.0, %v456_v17  ;;  %v496_v62 = vsub.f32 %v159_v52, %v480_v51 }
 0x143   :  { %952 = vpow2.f32 %v590_v57  ;;  %v487_v63 = vsub.f32 %v1350_v32, %v471_v58  ;;  %v566_v0 = vsub.f32 %v1383_v56, %v549_v47  ;;  %v567_v38 = vsub.f32 %v1383_v56, %v550_v31 }
 0x144   :  { %954 = vpow2.f32 %v606_v36  ;;  %v556_v2 = vmax.f32 %v540_v59, 0.0  ;;  %v495_v3 = vsub.f32 %v1368_v45, %v479_v61  ;;  %v548_v7 = vadd.f32 %v1396_v1, %v496_v62 }
 0x145   :  { %956 = vpow2.f32 %v608_v54  ;;  %v1476_v8 = vadd.s32 56, %v1364_v41  ;;  %v539_v32 = vadd.f32 %v1396_v1, %v487_v63  ;;  %v574_v24 = vsub.f32 %v1383_v56, %v557_v48 }
 0x146   :  { %v573_v20 = vsub.f32 %v1383_v56, %v556_v2  ;;  %v547_v31 = vadd.f32 %v1396_v1, %v495_v3  ;;  %v564_v47 = vmax.f32 %v548_v7, 0.0  ;;  %v582_v13 = vmul.f32 1.442695, %v566_v0 }
 0x147   :  { %v555_v4 = vmax.f32 %v539_v32, 0.0  ;;  %v575_v45 = vsub.f32 %v1383_v56, %v558_v34  ;;  %v584_v9 = vmul.f32 1.442695, %v567_v38  ;;  %v598_v12 = vmul.f32 1.442695, %v574_v24 }
 0x148   :  { %v943_v16 = vpop.eup %942  ;;  %v596_v17 = vmul.f32 1.442695, %v573_v20  ;;  %v563_v35 = vmax.f32 %v547_v31, 0.0  ;;  %v581_v25 = vsub.f32 %v1383_v56, %v564_v47  ;;  %958 = vpow2.f32 %v582_v13 }
 0x149   :  { %v945_v48 = vpop.eup %944  ;;  %v706_v18 = vadd.f32 %v943_v16, %v1386_v40  ;;  %v572_v1 = vsub.f32 %v1383_v56, %v555_v4  ;;  %960 = vpow2.f32 %v584_v9  ;;  %v637_v30 = vadd.s32 8, %v1364_v41 }
 0x14a   :  { %v947_v39 = vpop.eup %946  ;;  %v705_v21 = vadd.f32 %v945_v48, %v1391_v60  ;;  %962 = vpow2.f32 %v596_v17  ;;  %v580_v34 = vsub.f32 %v1383_v56, %v563_v35  ;;  %v612_v19 = vmul.f32 1.442695, %v581_v25 }
 0x14b   :  { %v949_v22 = vpop.eup %948  ;;  %722 = vst [vmem:[#allocation5 + $0x18] sm:$0xff] %v706_v18  ;;  %v713_v23 = vadd.f32 %v947_v39, %v1402_v5  ;;  %v594_v26 = vmul.f32 1.442695, %v572_v1  ;;  %964 = vpow2.f32 %v598_v12  ;;  %v600_v27 = vmul.f32 1.442695, %v575_v45 }
 0x14c   :  { %v951_v40 = vpop.eup %950  ;;  %721 = vst [vmem:[#allocation5 + $0x10] sm:$0xff] %v705_v21  ;;  %v714_v28 = vadd.f32 %v949_v22, %v1407_v6  ;;  %v610_v37 = vmul.f32 1.442695, %v580_v34  ;;  %966 = vpow2.f32 %v612_v19  ;;  %v644_v42 = vadd.s32 64, %v1364_v41 }
 0x14d   :  { %v953_v60 = vpop.eup %952  ;;  %729 = vst [vmem:[#allocation5 + $0x50] sm:$0xff] %v713_v23  ;;  %v708_v56 = vadd.f32 %v951_v40, %v1411_v10  ;;  %968 = vpow2.f32 %v594_v26  ;;  %v651_v43 = vadd.s32 120, %v1364_v41  ;;  %v642_v6 = vadd.s32 48, %v1364_v41 }
 0x14e   :  { %v955_v5 = vpop.eup %954  ;;  %730 = vst [vmem:[#allocation5 + $0x58] sm:$0xff] %v714_v28  ;;  %v707_v44 = vadd.f32 %v953_v60, %v1421_v14  ;;  %970 = vpow2.f32 %v610_v37  ;;  %vm671_vm11 = vcmp.eq.s32.totalorder %v637_v30, %v1370_v46  ;;  %vm677_vm12 = vcmp.eq.s32.totalorder %v1476_v8, %v1370_v46 }
 0x14f   :  { %v957_v49 = vpop.eup %956  ;;  %724 = vst [vmem:[#allocation5 + $0x28] sm:$0xff] %v708_v56  ;;  %v715_v33 = vadd.f32 %v955_v5, %v1424_v15  ;;  %v650_v10 = vadd.s32 112, %v1364_v41  ;;  %972 = vpow2.f32 %v600_v27  ;;  %v645_v14 = vadd.s32 72, %v1364_v41 }
 0x150   :  { %723 = vst [vmem:[#allocation5 + $0x20] sm:$0xff] %v707_v44  ;;  %v716_v50 = vadd.f32 %v957_v49, %v1414_v11  ;;  %vm678_vm13 = vcmp.eq.s32.totalorder %v644_v42, %v1370_v46  ;;  %v687_v51 = vsel %vm670_vm10, %v1381_v55, 0.0  ;;  %vm685_vm14 = vcmp.eq.s32.totalorder %v651_v43, %v1370_v46 }
 0x151   :  { %731 = vst [vmem:[#allocation5 + $0x60] sm:$0xff] %v715_v33  ;;  %v688_v15 = vsel %vm671_vm11, %v1381_v55, 0.0  ;;  %v694_v53 = vsel %vm677_vm12, %v1381_v55, 0.0  ;;  %vm676_vm15 = vcmp.eq.s32.totalorder %v642_v6, %v1370_v46  ;;  %vm684_vm0 = vcmp.eq.s32.totalorder %v650_v10, %v1370_v46 }
 0x152   :  { %v959_v52 = vpop.eup %958  ;;  %732 = vst [vmem:[#allocation5 + $0x68] sm:$0xff] %v716_v50  ;;  %v695_v54 = vsel %vm678_vm13, %v1381_v55, 0.0  ;;  %v702_v41 = vsel %vm685_vm14, %v1381_v55, 0.0  ;;  %vm679_vm1 = vcmp.eq.s32.totalorder %v645_v14, %v1370_v46  ;;  %v693_v61 = vsel %vm676_vm15, %v1381_v55, 0.0 }
 0x153   :  { %v961_v11 = vpop.eup %960  ;;  %v703_v29 = vadd.f32 %v959_v52, %v687_v51  ;;  %v701_v63 = vsel %vm684_vm0, %v1381_v55, 0.0  ;;  %v696_v3 = vsel %vm679_vm1, %v1381_v55, 0.0 }
 0x154   :  { %v963_v57 = vpop.eup %962  ;;  %v704_v36 = vadd.f32 %v961_v11, %v688_v15 }
 0x155   :  { %v965_v58 = vpop.eup %964  ;;  %v710_v59 = vadd.f32 %v963_v57, %v694_v53  ;;  %719 = vst [vmem:[#allocation5] sm:$0xff] %v703_v29 }
 0x156   :  { %v967_v62 = vpop.eup %966  ;;  %v711_v0 = vadd.f32 %v965_v58, %v695_v54  ;;  %720 = vst [vmem:[#allocation5 + $0x8] sm:$0xff] %v704_v36 }
 0x157   :  { %v969_v38 = vpop.eup %968  ;;  %726 = vst [vmem:[#allocation5 + $0x38] sm:$0xff] %v710_v59  ;;  %v718_v2 = vadd.f32 %v967_v62, %v702_v41 }
 0x158   :  { %v971_v7 = vpop.eup %970  ;;  %v709_v46 = vadd.f32 %v969_v38, %v693_v61  ;;  %727 = vst [vmem:[#allocation5 + $0x40] sm:$0xff] %v711_v0 }
 0x159   :  { %v973_v8 = vpop.eup %972  ;;  %v717_v32 = vadd.f32 %v971_v7, %v701_v63  ;;  %734 = vst [vmem:[#allocation5 + $0x78] sm:$0xff] %v718_v2 }
 0x15a   :  { %725 = vst [vmem:[#allocation5 + $0x30] sm:$0xff] %v709_v46  ;;  %v712_v24 = vadd.f32 %v973_v8, %v696_v3 }
 0x15b   :  { %733 = vst [vmem:[#allocation5 + $0x70] sm:$0xff] %v717_v32 }
 0x15c   :  { %728 = vst [vmem:[#allocation5 + $0x48] sm:$0xff] %v712_v24 }
 0x15d   :  { %997 = shalt.err (!%p994_p9)
}
 0x15e   :  { %s998_s29 = scalar_lea.hbm %s1540_s3, 2048 }
 0x15f   :  { %p999_p10 = scmp.ne.s32.totalorder %s1540_s3, %s998_s29  ;;  %p1002_p11 = scmp.lt.u32.totalorder %s998_s29, %s1540_s3 }
 0x161   :  { %p1004_p12 = pnand %p1002_p11, %p999_p10 }
 0x163   :  { %1007 = shalt.err (!%p1004_p12)
}
 0x164   :  { %s1014_s7 = smov 128   ;;  %s1015_s8 = smov 8  }
 0x165   :  { %746 = dma.vmem_to_hbm [thread:$0]  %s741_s26, 2048, %s1540_s3, [#allocation3], %s1014_s7, %s1014_s7, %s1015_s8  }
 0x166   :  { %1010 = dma.done.wait [#allocation3], 2048  }
 0x167   :  { %1011 = vsyncadd [#allocation3], 4294965248 }
 0x168   :  { %750 = vsyncpa [#allocation3], 1 }
 0x169   :  { %751 = vsyncpa [#allocation4], 1 }

</bundles_post_ra>
